<compile_context>
chip_gen: v7x
topology: tpu7x:2x2x1
jax: 0.10.0
libtpu: 0.0.40
codegen_flags: <defaults>
</compile_context>

<pallas_src>
import functools

import jax
import jax.numpy as jnp
from jax.experimental import pallas as pl
from jax.experimental.pallas import tpu as pltpu

LANE = 128            # TPU lane width; hidden/head widths padded to this.
BIAS_LANE = LANE - 1  # hidden lane reserved as the constant-1 bias carrier.


def _round_up(n, m):
    return ((n + m - 1) // m) * m


# ---------------------------------------------------------------------------
# Kernel: out = relu(x_aug @ W1_aug) @ Wh_aug   (all biases folded in).
# ---------------------------------------------------------------------------
def policy_kernel(x_ref, w1_ref, wh_ref, out_ref):
    h = jnp.maximum(
        jnp.dot(x_ref[...], w1_ref[...], preferred_element_type=jnp.float32),
        0.0)
    out_ref[...] = jnp.dot(
        h, wh_ref[...], preferred_element_type=jnp.float32
    ).astype(out_ref.dtype)


# ---------------------------------------------------------------------------
# One-time parameter packing (call at init / whenever params change,
# NOT on every env step).
# ---------------------------------------------------------------------------
def pack_policy_params(params):
    """Pack (w1,b1,w2,b2,wv,bv,sigma) into two lane-dense operands.

    Returns:
      w1_aug: [S+1, 128]  fc1 weights; row S = b1; lane 127 of row S = 1.0
              (the constant-1 bias-carrier lane for the head biases).
      wh_aug: [128, 128]  fused [fc2_mean | value_NN] weights; row 127 = [b2|bv].
    """
    w1, b1, w2, b2, wv, bv, _sigma = params
    S, H = w1.shape
    A = w2.shape[1]
    if H > LANE - 1:
        raise ValueError(
            f"hidden={H} must be <= {LANE - 1} (one lane reserved for bias carry)")
    if A + 1 > LANE:
        raise ValueError(f"action_space+1={A + 1} must be <= {LANE}")

    w1_aug = jnp.zeros((S + 1, LANE), jnp.float32)
    w1_aug = w1_aug.at[:S, :H].set(w1.astype(jnp.float32))
    w1_aug = w1_aug.at[S, :H].set(b1.reshape(-1).astype(jnp.float32))
    w1_aug = w1_aug.at[S, BIAS_LANE].set(1.0)

    wh_aug = jnp.zeros((LANE, LANE), jnp.float32)
    wh_aug = wh_aug.at[:H, :A].set(w2.astype(jnp.float32))
    wh_aug = wh_aug.at[:H, A:A + 1].set(wv.astype(jnp.float32))
    wh_aug = wh_aug.at[BIAS_LANE, :A].set(b2.reshape(-1).astype(jnp.float32))
    wh_aug = wh_aug.at[BIAS_LANE, A].set(bv.reshape(-1)[0].astype(jnp.float32))
    return w1_aug, wh_aug


def _pick_bm(B):
    """Batch-tile size.

    Small B: a single 8-row-aligned block (one grid step).
    Large B: fat blocks (<=512 rows) to amortize per-grid-step overhead on
    single-TC chips (v5e/v6e), while targeting >=2 blocks so the "parallel"
    batch axis shards across both TensorCores on v7x.
    """
    if B <= 64:
        return _round_up(B, 8)
    return max(8, min(512, _round_up(pl.cdiv(B, 2), 8)))


# ---------------------------------------------------------------------------
# Jitted forward: ones-column append + pallas_call + slicing + sigma glue
# all fuse into one executable.
# ---------------------------------------------------------------------------
@functools.partial(jax.jit, static_argnames=("action_space", "sigma_type"))
def policy_forward(x, w1_aug, wh_aug, sigma, *, action_space,
                   sigma_type="learn_sigma", ep=None):
    """Returns (mu, sigma, value) — mu/sigma are the Normal() parameters."""
    B, S = x.shape
    assert w1_aug.shape == (S + 1, LANE)
    assert wh_aug.shape == (LANE, LANE)
    A = action_space

    # Drive the folded b1 row and the bias-carrier lane with a ones column.
    x_aug = jnp.concatenate(
        [x.astype(jnp.float32), jnp.ones((B, 1), jnp.float32)], axis=1)

    bm = _pick_bm(B)
    grid = (pl.cdiv(B, bm),)  # ragged tail block handled by Pallas (no x pad copy)

    out = pl.pallas_call(
        policy_kernel,
        out_shape=jax.ShapeDtypeStruct((B, LANE), jnp.float32),
        grid_spec=pltpu.PrefetchScalarGridSpec(
            num_scalar_prefetch=0,
            grid=grid,
            in_specs=[
                pl.BlockSpec((bm, S + 1), lambda i: (i, 0)),      # x tile
                pl.BlockSpec((S + 1, LANE), lambda i: (0, 0)),    # W1_aug (resident)
                pl.BlockSpec((LANE, LANE), lambda i: (0, 0)),     # fused heads (resident)
            ],
            out_specs=pl.BlockSpec((bm, LANE), lambda i: (i, 0)),
        ),
        compiler_params=pltpu.CompilerParams(
            dimension_semantics=("parallel",)),
    )(x_aug, w1_aug, wh_aug)

    mu = out[:, :A]
    value = out[:, A:A + 1]

    if sigma_type == "exp_decay":
        if ep is None:
            raise ValueError("ep must be provided when sigma_type='exp_decay'")
        sigma_out = sigma * jnp.exp(-5e-4 * jnp.asarray(ep, jnp.float32))
    else:
        sigma_out = sigma
    return mu, sigma_out, value


def init_params(key, state_space, action_space, hidden=64):
    """Deterministic init matching Policy.init_weights():
    weights ~ N(0, 1), biases = 0, sigma = 10."""
    k1, k2, k3 = jax.random.split(key, 3)
    w1 = jax.random.normal(k1, (state_space, hidden), jnp.float32)
    b1 = jnp.zeros((1, hidden), jnp.float32)
    w2 = jax.random.normal(k2, (hidden, action_space), jnp.float32)
    b2 = jnp.zeros((1, action_space), jnp.float32)
    wv = jax.random.normal(k3, (hidden, 1), jnp.float32)
    bv = jnp.zeros((1, 1), jnp.float32)
    sigma = jnp.array([10.0], jnp.float32)
    return (w1, b1, w2, b2, wv, bv, sigma)


if __name__ == "__main__":
    key = jax.random.PRNGKey(0)
    kx, kp = jax.random.split(key)

    batch = 2
    state_space = 4       # CartPole-style observation
    action_space = 2
    hidden = 64

    x = jax.random.normal(kx, (batch, state_space), jnp.float32)
    params = init_params(kp, state_space, action_space, hidden)
    w1, b1, w2, b2, wv, bv, sigma = params

    # Pack / pad weights ONCE (hoisted out of the per-step path).
    w1_aug, wh_aug = jax.block_until_ready(pack_policy_params(params))

    mu, sig, value = policy_forward(
        x, w1_aug, wh_aug, sigma, action_space=action_space,
        sigma_type="exp_decay", ep=100)
    jax.block_until_ready((mu, sig, value))

    assert mu.shape == (batch, action_space)
    assert value.shape == (batch, 1)
    assert sig.shape == (1,)

    # Pure-JAX reference against the original (unpacked) weights.
    h_ref = jnp.maximum(x @ w1 + b1, 0.0)
    assert jnp.allclose(mu, h_ref @ w2 + b2, atol=1e-5, rtol=1e-5)
    assert jnp.allclose(value, h_ref @ wv + bv, atol=1e-5, rtol=1e-5)
    assert jnp.allclose(sig, sigma * jnp.exp(-5e-4 * 100.0), atol=1e-6)

    # Exercise the multi-block gridded path with a ragged batch (300 rows).
    xb = jax.random.normal(kx, (300, state_space), jnp.float32)
    mub, sigb, valb = policy_forward(
        xb, w1_aug, wh_aug, sigma, action_space=action_space,
        sigma_type="learn_sigma")
    jax.block_until_ready((mub, sigb, valb))
    hb = jnp.maximum(xb @ w1 + b1, 0.0)
    assert jnp.allclose(mub, hb @ w2 + b2, atol=1e-4, rtol=1e-5)
    assert jnp.allclose(valb, hb @ wv + bv, atol=1e-4, rtol=1e-5)
    assert jnp.allclose(sigb, sigma, atol=0.0)

    # Non-zero biases exercise the bias-folding (extra W1 row + lane-127 carry).
    kb1, kb2, kb3 = jax.random.split(kp, 3)
    b1n = 0.1 * jax.random.normal(kb1, (1, hidden), jnp.float32)
    b2n = 0.1 * jax.random.normal(kb2, (1, action_space), jnp.float32)
    bvn = 0.1 * jax.random.normal(kb3, (1, 1), jnp.float32)
    w1b_aug, whb_aug = pack_policy_params((w1, b1n, w2, b2n, wv, bvn, sigma))
    mu2, _, val2 = policy_forward(
        xb, w1b_aug, whb_aug, sigma, action_space=action_space)
    jax.block_until_ready((mu2, val2))
    h2 = jnp.maximum(xb @ w1 + b1n, 0.0)
    assert jnp.allclose(mu2, h2 @ w2 + b2n, atol=1e-4, rtol=1e-5)
    assert jnp.allclose(val2, h2 @ wv + bvn, atol=1e-4, rtol=1e-5)

    print("KERNEL_OK")
</pallas_src>

<mosaic_0001>
module attributes {stable_mosaic.version = 11 : i64} {
  func.func @policy_kernel(%arg0: i32, %arg1: memref<8x5xf32, #tpu.memory_space<vmem>>, %arg2: memref<5x128xf32, #tpu.memory_space<vmem>>, %arg3: memref<128x128xf32, #tpu.memory_space<vmem>>, %arg4: memref<8x128xf32, #tpu.memory_space<vmem>>) attributes {dimension_semantics = [#tpu.dimension_semantics<parallel>], iteration_bounds = array<i64: 1>, scalar_prefetch = 0 : i64, scratch_operands = 0 : i64, tpu.core_type = #tpu.core_type<tc>, window_params = [{transform_indices = @transform_0, window_bounds = array<i64: 8, 5>}, {pipeline_mode = #tpu.pipeline_mode<synchronous>, transform_indices = @transform_1, window_bounds = array<i64: 5, 128>}, {pipeline_mode = #tpu.pipeline_mode<synchronous>, transform_indices = @transform_2, window_bounds = array<i64: 128, 128>}, {transform_indices = @transform_3, window_bounds = array<i64: 8, 128>}]} {
    %c0 = arith.constant 0 : index
    %c0_0 = arith.constant 0 : index
    %0 = vector.load %arg1[%c0, %c0_0] : memref<8x5xf32, #tpu.memory_space<vmem>>, vector<8x5xf32>
    %c0_1 = arith.constant 0 : index
    %c0_2 = arith.constant 0 : index
    %1 = vector.load %arg2[%c0_1, %c0_2] : memref<5x128xf32, #tpu.memory_space<vmem>>, vector<5x128xf32>
    %cst = arith.constant dense<0.000000e+00> : vector<8x128xf32>
    %2 = tpu.matmul %0, %1, %cst {dimension_numbers = #tpu.dot_dimension_numbers<[1], [0], [0], [1], [0, 0, 1, 1], [], []>} : vector<8x5xf32>, vector<5x128xf32>, vector<8x128xf32> -> vector<8x128xf32>
    %cst_3 = arith.constant 0.000000e+00 : f32
    %3 = vector.broadcast %cst_3 : f32 to vector<8x128xf32>
    %4 = arith.maximumf %2, %3 : vector<8x128xf32>
    %c0_4 = arith.constant 0 : index
    %c0_5 = arith.constant 0 : index
    %5 = vector.load %arg3[%c0_4, %c0_5] : memref<128x128xf32, #tpu.memory_space<vmem>>, vector<128x128xf32>
    %cst_6 = arith.constant dense<0.000000e+00> : vector<8x128xf32>
    %6 = tpu.matmul %4, %5, %cst_6 {dimension_numbers = #tpu.dot_dimension_numbers<[1], [0], [0], [1], [0, 0, 1, 1], [], []>} : vector<8x128xf32>, vector<128x128xf32>, vector<8x128xf32> -> vector<8x128xf32>
    %c0_7 = arith.constant 0 : index
    %c0_8 = arith.constant 0 : index
    %7 = vector.load %arg4[%c0_7, %c0_8] : memref<8x128xf32, #tpu.memory_space<vmem>>, vector<8x128xf32>
    tpu.vector_store %arg4[%c0_7, %c0_8], %6 {strides = array<i32>} : memref<8x128xf32, #tpu.memory_space<vmem>>, vector<8x128xf32>,
    return
  }
  func.func @transform_0(%arg0: i32) -> (i32, i32) {
    %c0_i32 = arith.constant 0 : i32
    %c0_i32_0 = arith.constant 0 : i32
    return %arg0, %c0_i32 : i32, i32
  }
  func.func @transform_1(%arg0: i32) -> (i32, i32) {
    %c0_i32 = arith.constant 0 : i32
    %c0_i32_0 = arith.constant 0 : i32
    %c0_i32_1 = arith.constant 0 : i32
    return %c0_i32, %c0_i32_0 : i32, i32
  }
  func.func @transform_2(%arg0: i32) -> (i32, i32) {
    %c0_i32 = arith.constant 0 : i32
    %c0_i32_0 = arith.constant 0 : i32
    %c0_i32_1 = arith.constant 0 : i32
    return %c0_i32, %c0_i32_0 : i32, i32
  }
  func.func @transform_3(%arg0: i32) -> (i32, i32) {
    %c0_i32 = arith.constant 0 : i32
    %c0_i32_0 = arith.constant 0 : i32
    return %arg0, %c0_i32 : i32, i32
  }
}

</mosaic_0001>

<bundles_post_ra>
// kernel: policy_forward.1
= control target key start
LH: loop header
LB: loop body
LE: loop exit
PB: predicated region body
PF: predicated region fallthrough
CT: control target
= control target key end

     0   :  { %8 = vsyncpa [#allocation3], 0  ;;  %s351_s12 = smov [#allocation2]   ;;  %s398_s0 = inlined_call_operand.vmem [shape: f32[2,5], index: 0, kind: input, shape index: {}]   ;;  %s399_s1 = inlined_call_operand.vmem [shape: f32[5,128], index: 1, kind: input, shape index: {}]   ;;  %s400_s2 = inlined_call_operand.hbm [shape: f32[128,128], index: 2, kind: input, shape index: {}]   ;;  %s401_s3 = inlined_call_operand.vmem [shape: f32[2,128], index: 3, kind: output, shape index: {}]  }
   0x1   :  { %s18_s13 = sshll.u32 %s351_s12, 4  ;;  %s327_s16 = scalar_lea.hbm %s400_s2, 2048  ;;  %s19_s13 = int_to_ptr.vmem [resolvable:$true] %s18_s13 }
   0x2   :  { %p328_p0 = scmp.ne.s32.totalorder %s400_s2, %s327_s16  ;;  %p331_p1 = scmp.lt.u32.totalorder %s327_s16, %s400_s2 }
   0x4   :  { %p333_p2 = pnand %p331_p1, %p328_p0 }
   0x6   :  { %336 = shalt.err (!%p333_p2)
}
   0x7   :  { %s337_s21 = scalar_lea.vmem %s19_s13, 2048  ;;  %p342_p4 = scmp.lt.s32.totalorder %s19_s13, %s19_s13 }
   0x8   :  { %p338_p3 = scmp.ne.s32.totalorder %s19_s13, %s337_s21  ;;  %p343_p5 = scmp.lt.s32.totalorder %s337_s21, %s337_s21 }
   0xa   :  { %p344_p6 = por %p343_p5, %p342_p4 }
   0xc   :  { %p345_p7 = pnand %p344_p6, %p338_p3 }
   0xe   :  { %348 = shalt.err (!%p345_p7)
}
   0xf   :  { %s352_s22 = smov 128   ;;  %s353_s23 = smov 8  }
  0x10   :  { %24 = dma.hbm_to_vmem [thread:$0]  %s400_s2, 2048, %s19_s13, [#allocation3], %s352_s22, %s352_s22, %s353_s23  }
  0x11   :  { %349 = dma.done.wait [#allocation3], 2048  }
  0x12   :  { %350 = vsyncadd [#allocation3], 4294965248  ;;  %v354_v0 = vmov 0.0   ;;  %vm355_vm0 = vmmov 0   ;;  %v356_v1 = vmov 0.0|0.0   ;;  %vm34_vm1 = vcmask 1044480  }
  0x13   :  { %257 = vmatprep.subr.mxu0 %v354_v0  ;;  %259 = vmatprep.mubr.msk.f32.mxu0 %vm355_vm0, %v354_v0  ;;  %vm30_vm2 = vcmask 39936   ;;  %v29_v2 = vld [vmem:[%s399_s1] sm:$0x1f]  ;;  %v110_v5 = vld [vmem:[#allocation2 + $0x8] sm:$0xff]  ;;  %v111_v6 = vld [vmem:[#allocation2 + $0x10] sm:$0xff] }
  0x14   :  { %297 = vmatprep.subr.bf16.mxu1 %v356_v1  ;;  %294 = vmatprep.mubr.msk.f32.mxu1 %vm355_vm0, %v354_v0  ;;  %v28_v3 = vld [vmem:[%s398_s0] sm:$0xff]  ;;  %v112_v7 = vld [vmem:[#allocation2 + $0x18] sm:$0xff]  ;;  %v114_v11 = vld [vmem:[#allocation2 + $0x28] sm:$0xff] }
  0x15   :  { %v109_v4 = vld [vmem:[#allocation2] sm:$0xff]  ;;  %258 = vmatpush3.msk.msra.mxu0 %vm34_vm1, %v29_v2  ;;  %v301_v9 = vpack.c.bf16 %v112_v7, %v111_v6  ;;  %v115_v13 = vld [vmem:[#allocation2 + $0x30] sm:$0xff]  ;;  %v116_v14 = vld [vmem:[#allocation2 + $0x38] sm:$0xff] }
  0x16   :  { %260 = vmatmul.mubr.msk.f32.vlgmr.msra.gmra.mrb[0].mxu0 %vm30_vm2, %v28_v3  ;;  %v298_v8 = vpack.c.bf16 %v110_v5, %v109_v4  ;;  %v113_v10 = vld [vmem:[#allocation2 + $0x20] sm:$0xff]  ;;  %v307_v15 = vpack.c.bf16 %v116_v14, %v115_v13  ;;  %v118_v17 = vld [vmem:[#allocation2 + $0x48] sm:$0xff]  ;;  %v119_v19 = vld [vmem:[#allocation2 + $0x50] sm:$0xff] }
  0x17   :  { %v304_v12 = vpack.c.bf16 %v114_v11, %v113_v10  ;;  %v117_v16 = vld [vmem:[#allocation2 + $0x40] sm:$0xff]  ;;  %v120_v20 = vld [vmem:[#allocation2 + $0x58] sm:$0xff]  ;;  %v122_v23 = vld [vmem:[#allocation2 + $0x68] sm:$0xff] }
  0x18   :  { %299 = vmatpush3.bf16.msra.mxu1 %v298_v8  ;;  %v310_v18 = vpack.c.bf16 %v118_v17, %v117_v16  ;;  %v313_v21 = vpack.c.bf16 %v120_v20, %v119_v19  ;;  %v121_v22 = vld [vmem:[#allocation2 + $0x60] sm:$0xff]  ;;  %v123_v25 = vld [vmem:[#allocation2 + $0x70] sm:$0xff]  ;;  %v124_v26 = vld [vmem:[#allocation2 + $0x78] sm:$0xff] }
  0x19   :  { %300 = vmatprep.subr.bf16.mxu1 %v356_v1  ;;  %v316_v24 = vpack.c.bf16 %v122_v23, %v121_v22  ;;  %v319_v27 = vpack.c.bf16 %v124_v26, %v123_v25 }
  0x1c   :  { %302 = vmatpush3.bf16.msra.mxu1 %v301_v9 }
  0x1d   :  { %303 = vmatprep.subr.bf16.mxu1 %v356_v1 }
  0x20   :  { %305 = vmatpush3.bf16.msra.mxu1 %v304_v12 }
  0x21   :  { %306 = vmatprep.subr.bf16.mxu1 %v356_v1 }
  0x24   :  { %308 = vmatpush3.bf16.msra.mxu1 %v307_v15 }
  0x25   :  { %309 = vmatprep.subr.bf16.mxu1 %v356_v1 }
  0x28   :  { %311 = vmatpush3.bf16.msra.mxu1 %v310_v18 }
  0x29   :  { %312 = vmatprep.subr.bf16.mxu1 %v356_v1 }
  0x2c   :  { %314 = vmatpush3.bf16.msra.mxu1 %v313_v21 }
  0x2d   :  { %315 = vmatprep.subr.bf16.mxu1 %v356_v1 }
  0x30   :  { %317 = vmatpush3.bf16.msra.mxu1 %v316_v24 }
  0x31   :  { %318 = vmatprep.subr.bf16.mxu1 %v356_v1 }
  0x34   :  { %320 = vmatpush3.bf16.msra.mxu1 %v319_v27 }
  0xe9   :  { %v104_v28 = vpop.f32.mrb[0].mxu0 }
  0xea   :  { %v108_v29 = vmax.f32 %v104_v28, 0.0  ;;  %v261_v30 = vpop.f32.mrb[1].mxu0 }
  0xec   :  { %295 = vmatmul.mubr.f32.vlgmr.msra.gmra.mrb[0].mxu1 %v108_v29 }
 0x1bf   :  { %v191_v31 = vpop.f32.mrb[0].mxu1 }
 0x1c0   :  { %195 = vst [vmem:[#allocation4] sm:$0xff] %v191_v31  ;;  %v296_v32 = vpop.f32.mrb[1].mxu1 }
 0x1c7   :  { %v213_v33 = vld [vmem:[#allocation4] sm:$0x3] }
 0x1c8   :  { %214 = vst [vmem:[%s401_s3] sm:$0x3] %v213_v33 }
 0x1c9   :  { %231 = vsyncpa [#allocation3], 1 }

</bundles_post_ra>
